<compile_context>
chip_gen: v6e
topology: v6e:2x2x1
jax: 0.10.0
libtpu: 0.0.40
codegen_flags: <defaults>
</compile_context>

<pallas_src>
import functools

import jax
import jax.numpy as jnp
from jax.experimental import pallas as pl
from jax.experimental.pallas import tpu as pltpu

BN_EPS = 1e-5  # torch.nn.BatchNorm1d default


# ---------------------------------------------------------------------------
# Fused kernel
# ---------------------------------------------------------------------------
def _fused_kernel(x_ref, wc_ref, gamma_ref, beta_ref, a3_ref, bfold_ref,
                  o_ref,
                  sum_ref, sumsq_ref, scale_ref, shift_ref,
                  *, TB, L, inv_m):
    """grid = (phase, row-tile).  phase 0: global BN statistics.
    phase 1: conv -> folded BN+ReLU -> permuted folded head -> sigmoid."""
    phase = pl.program_id(0)
    i = pl.program_id(1)
    nm = pl.num_programs(1)

    # Conv1d(kernel_size=1) == per-row channel matmul on the MXU.
    # Conv bias is intentionally dropped: it is exactly cancelled by the
    # train-mode BatchNorm mean subtraction (saves a full M*128 VPU pass).
    h = jnp.dot(x_ref[...], wc_ref[...],
                preferred_element_type=jnp.float32)            # (TM, 128)

    @pl.when(phase == 0)
    def _accumulate_stats():
        @pl.when(i == 0)
        def _init():
            sum_ref[...] = jnp.zeros_like(sum_ref)
            sumsq_ref[...] = jnp.zeros_like(sumsq_ref)

        # one pass: sum and sum-of-squares together
        sum_ref[...] += jnp.sum(h, axis=0, keepdims=True)
        sumsq_ref[...] += jnp.sum(h * h, axis=0, keepdims=True)

        @pl.when(i == nm - 1)
        def _finalize():
            mean = sum_ref[...] * inv_m
            var = sumsq_ref[...] * inv_m - mean * mean   # biased var == torch train BN
            scale = gamma_ref[...] * jax.lax.rsqrt(var + BN_EPS)
            scale_ref[...] = scale
            shift_ref[...] = beta_ref[...] - mean * scale

    @pl.when(phase == 1)
    def _apply():
        # Folded BN (single scale/shift pass) + ReLU.  MaxPool1d(k=1) == identity.
        hn = jnp.maximum(h * scale_ref[...] + shift_ref[...], 0.0)   # (TM, 128)
        hn3 = hn.reshape(TB, L, 128)                                 # rows = (batch, pos)

        # Fused `view(-1,128) -> Linear(128,64) -> Linear(64,1)`:
        #   y[b, j] = sum_{l,c} hn3[b, l, c] * A3[l, c, j] + b_fold
        # where A3 encodes the PyTorch NCL view permutation composed with the
        # folded fc1@fc2 weight vector (built once in the wrapper).
        acc = jnp.broadcast_to(bfold_ref[...], (TB, L))
        for l in range(L):                                           # unrolled, L small
            acc = acc + jnp.dot(hn3[:, l, :], a3_ref[l],
                                preferred_element_type=jnp.float32)  # (TB, L)
        o_ref[...] = jax.nn.sigmoid(acc)


# ---------------------------------------------------------------------------
# Tiling choice: whole batches per tile (the view(-1,128) permutation never
# crosses a batch boundary), ~2K rows per tile, sublane-aligned blocks.
# ---------------------------------------------------------------------------
def _pick_tiles(N, L):
    rows = N * L
    if rows <= 2048:                          # single block == full array dims
        return N, 1
    tb = max(8, (2048 // L) // 8 * 8)         # batches per tile, multiple of 8
    nm = -(-N // tb)
    if nm <= 1:
        return N, 1
    return tb, nm


# ---------------------------------------------------------------------------
# Wrapper
# ---------------------------------------------------------------------------
def cnn_model_forward(x, params):
    """x: (N, n_features, L) float32, NCL layout like the PyTorch module."""
    N, C_in, L = x.shape
    f32 = jnp.float32
    x = x.astype(f32)

    # --- fold fc1 -> fc2 (no nonlinearity between them) ---------------------
    w_fold = (params["w1"] @ params["w2"]).reshape(128).astype(f32)        # (128,)
    b_fold = (params["b1"] @ params["w2"] + params["b2"]).reshape(1, 1).astype(f32)

    # --- permuted folded head A3 (L, 128, L) --------------------------------
    # A3[l, c, j] = w_fold[(c*L + l) % 128]  if (c*L + l) // 128 == j else 0
    # (exactly reproduces PyTorch's view(-1,128) on the contiguous NCL tensor)
    c_idx = jnp.arange(128)
    l_idx = jnp.arange(L)
    flat = c_idx[None, :] * L + l_idx[:, None]                 # (L, 128)
    j_of = flat // 128
    k_of = flat % 128
    a3 = jnp.where(j_of[:, :, None] == jnp.arange(L)[None, None, :],
                   w_fold[k_of][:, :, None], 0.0).astype(f32)  # (L, 128, L)
    # NOTE: A3 scales as L^2*128 floats — fine for the modest L this model's
    # view(-1,128) semantics imply; very large L would need a different head.

    # --- layout + tiling -----------------------------------------------------
    TB, nm = _pick_tiles(N, L)
    N_pad = TB * nm
    TM = TB * L

    # (N, C_in, L) -> (N, L, C_in) -> (N*L, C_in): rows are (n, l), channels on lanes.
    x2d = jnp.transpose(x, (0, 2, 1)).reshape(N * L, C_in)
    if N_pad != N:
        # zero-padded batches: contribute 0 to the BN sums (no conv bias), and
        # their outputs are sliced off below.
        x2d = jnp.pad(x2d, ((0, (N_pad - N) * L), (0, 0)))

    inv_m = 1.0 / float(N * L)   # divide stats by the REAL row count only

    kernel = functools.partial(_fused_kernel, TB=TB, L=L, inv_m=inv_m)

    out = pl.pallas_call(
        kernel,
        out_shape=jax.ShapeDtypeStruct((N_pad, L), f32),
        grid_spec=pltpu.PrefetchScalarGridSpec(
            num_scalar_prefetch=0,
            grid=(2, nm),                                   # (phase, row tile)
            in_specs=[
                pl.BlockSpec((TM, C_in), lambda p, i: (i, 0)),       # x rows
                pl.BlockSpec((C_in, 128), lambda p, i: (0, 0)),      # conv weight
                pl.BlockSpec((1, 128), lambda p, i: (0, 0)),         # gamma
                pl.BlockSpec((1, 128), lambda p, i: (0, 0)),         # beta
                pl.BlockSpec((L, 128, L), lambda p, i: (0, 0, 0)),   # permuted head
                pl.BlockSpec((1, 1), lambda p, i: (0, 0)),           # folded bias
            ],
            out_specs=pl.BlockSpec((TB, L), lambda p, i: (i, 0)),
            scratch_shapes=[pltpu.VMEM((1, 128), f32)] * 4,   # sum, sumsq, scale, shift
        ),
        compiler_params=pltpu.CompilerParams(
            # BN statistics accumulate across both grid axes -> keep them serial.
            dimension_semantics=("arbitrary", "arbitrary")),
    )(x2d, params["w_conv"], params["gamma"], params["beta"], a3, b_fold)

    return out[:N].reshape(-1)   # drop padded batches; final .view(-1)


# ---------------------------------------------------------------------------
# Pure-JAX reference (mirrors the PyTorch module, incl. the conv bias) used to
# verify the kernel (and the bias-cancellation / permutation folding) in main.
# ---------------------------------------------------------------------------
def _reference_forward(x, params):
    x = x.astype(jnp.float32)
    h = jnp.einsum("ncl,co->nol", x, params["w_conv"]) \
        + params["b_conv"].reshape(1, 128, 1)                        # (N, 128, L)
    mean = h.mean(axis=(0, 2), keepdims=True)
    var = ((h - mean) ** 2).mean(axis=(0, 2), keepdims=True)         # biased (train BN)
    h = (h - mean) / jnp.sqrt(var + BN_EPS)
    h = h * params["gamma"].reshape(1, 128, 1) + params["beta"].reshape(1, 128, 1)
    h = jnp.maximum(h, 0.0)                                          # ReLU; MaxPool1d(1)=id
    v = h.reshape(-1, 128)                                           # torch .view(-1, 128)
    z = v @ params["w1"] + params["b1"]
    z = z @ params["w2"] + params["b2"]
    return jax.nn.sigmoid(z).reshape(-1)


def init_params(key, n_features):
    """Deterministic synthetic parameters matching the PyTorch module shapes."""
    k = jax.random.split(key, 8)
    f32 = jnp.float32
    # Conv1d(n_features, 128, k=1): weight (128, n_features, 1) stored transposed.
    w_conv = jax.random.normal(k[0], (n_features, 128), f32) * 0.1
    b_conv = jax.random.normal(k[1], (1, 128), f32) * 0.1   # cancelled by train-mode BN
    # BatchNorm1d(128) affine params (randomized slightly to exercise the path).
    gamma = 1.0 + 0.1 * jax.random.normal(k[2], (1, 128), f32)
    beta = 0.1 * jax.random.normal(k[3], (1, 128), f32)
    # Linear(128, 64) / Linear(64, 1), stored transposed for row-major matmul.
    w1 = jax.random.normal(k[4], (128, 64), f32) * 0.1
    b1 = jax.random.normal(k[5], (1, 64), f32) * 0.1
    w2 = jax.random.normal(k[6], (64, 1), f32) * 0.1
    b2 = jax.random.normal(k[7], (1, 1), f32) * 0.1
    return dict(w_conv=w_conv, b_conv=b_conv, gamma=gamma, beta=beta,
                w1=w1, b1=b1, w2=w2, b2=b2)


if __name__ == "__main__":
    key = jax.random.PRNGKey(0)
    k_x, k_p = jax.random.split(key)

    N, n_features, L = 2, 16, 8            # small NCL input (batch, channels, length)
    x = jax.random.normal(k_x, (N, n_features, L), jnp.float32)
    params = init_params(k_p, n_features)

    out = jax.jit(cnn_model_forward)(x, params)
    out = jax.block_until_ready(out)

    assert out.shape == (N * L,), out.shape
    assert bool(jnp.all(jnp.isfinite(out)))

    ref = _reference_forward(x, params)
    assert bool(jnp.allclose(out, ref, atol=5e-3, rtol=0.0)), \
        float(jnp.max(jnp.abs(out - ref)))

    print("KERNEL_OK")
</pallas_src>

<mosaic_0001>
module attributes {stable_mosaic.version = 11 : i64} {
  func.func @_fused_kernel(%arg0: i32, %arg1: i32, %arg2: memref<16x16xf32, #tpu.memory_space<vmem>>, %arg3: memref<16x128xf32, #tpu.memory_space<vmem>>, %arg4: memref<1x128xf32, #tpu.memory_space<vmem>>, %arg5: memref<1x128xf32, #tpu.memory_space<vmem>>, %arg6: memref<8x128x8xf32, #tpu.memory_space<vmem>>, %arg7: memref<1x1xf32, #tpu.memory_space<vmem>>, %arg8: memref<2x8xf32, #tpu.memory_space<vmem>>, %arg9: memref<1x128xf32, #tpu.memory_space<vmem>>, %arg10: memref<1x128xf32, #tpu.memory_space<vmem>>, %arg11: memref<1x128xf32, #tpu.memory_space<vmem>>, %arg12: memref<1x128xf32, #tpu.memory_space<vmem>>) attributes {dimension_semantics = [#tpu.dimension_semantics<arbitrary>, #tpu.dimension_semantics<arbitrary>], iteration_bounds = array<i64: 2, 1>, scalar_prefetch = 0 : i64, scratch_operands = 4 : i64, tpu.core_type = #tpu.core_type<tc>, window_params = [{transform_indices = @transform_0, window_bounds = array<i64: 16, 16>}, {pipeline_mode = #tpu.pipeline_mode<synchronous>, transform_indices = @transform_1, window_bounds = array<i64: 16, 128>}, {pipeline_mode = #tpu.pipeline_mode<synchronous>, transform_indices = @transform_2, window_bounds = array<i64: 1, 128>}, {pipeline_mode = #tpu.pipeline_mode<synchronous>, transform_indices = @transform_3, window_bounds = array<i64: 1, 128>}, {pipeline_mode = #tpu.pipeline_mode<synchronous>, transform_indices = @transform_4, window_bounds = array<i64: 8, 128, 8>}, {pipeline_mode = #tpu.pipeline_mode<synchronous>, transform_indices = @transform_5, window_bounds = array<i64: 1, 1>}, {transform_indices = @transform_6, window_bounds = array<i64: 2, 8>}]} {
    %c0 = arith.constant 0 : index
    %c0_0 = arith.constant 0 : index
    %0 = vector.load %arg2[%c0, %c0_0] : memref<16x16xf32, #tpu.memory_space<vmem>>, vector<16x16xf32>
    %c0_1 = arith.constant 0 : index
    %c0_2 = arith.constant 0 : index
    %1 = vector.load %arg3[%c0_1, %c0_2] : memref<16x128xf32, #tpu.memory_space<vmem>>, vector<16x128xf32>
    %cst = arith.constant dense<0.000000e+00> : vector<16x128xf32>
    %2 = tpu.matmul %0, %1, %cst {dimension_numbers = #tpu.dot_dimension_numbers<[1], [0], [0], [1], [0, 0, 1, 1], [], []>} : vector<16x16xf32>, vector<16x128xf32>, vector<16x128xf32> -> vector<16x128xf32>
    %c0_i32 = arith.constant 0 : i32
    %3 = arith.cmpi eq, %arg0, %c0_i32 : i32
    %4 = arith.extui %3 : i1 to i32
    %c0_i32_3 = arith.constant 0 : i32
    %5 = arith.cmpi ne, %4, %c0_i32_3 : i32
    scf.if %5 {
      %c0_i32_5 = arith.constant 0 : i32
      %9 = arith.cmpi eq, %arg1, %c0_i32_5 : i32
      %10 = arith.extui %9 : i1 to i32
      %c0_i32_6 = arith.constant 0 : i32
      %11 = arith.cmpi ne, %10, %c0_i32_6 : i32
      scf.if %11 {
        %cst_19 = arith.constant 0.000000e+00 : f32
        %26 = vector.broadcast %cst_19 : f32 to vector<1x128xf32>
        %c0_20 = arith.constant 0 : index
        %c0_21 = arith.constant 0 : index
        %27 = vector.load %arg9[%c0_20, %c0_21] : memref<1x128xf32, #tpu.memory_space<vmem>>, vector<1x128xf32>
        tpu.vector_store %arg9[%c0_20, %c0_21], %26 {strides = array<i32>} : memref<1x128xf32, #tpu.memory_space<vmem>>, vector<1x128xf32>,
        %cst_22 = arith.constant 0.000000e+00 : f32
        %28 = vector.broadcast %cst_22 : f32 to vector<1x128xf32>
        %c0_23 = arith.constant 0 : index
        %c0_24 = arith.constant 0 : index
        %29 = vector.load %arg10[%c0_23, %c0_24] : memref<1x128xf32, #tpu.memory_space<vmem>>, vector<1x128xf32>
        tpu.vector_store %arg10[%c0_23, %c0_24], %28 {strides = array<i32>} : memref<1x128xf32, #tpu.memory_space<vmem>>, vector<1x128xf32>,
      } else {
      }
      %c0_7 = arith.constant 0 : index
      %c0_8 = arith.constant 0 : index
      %12 = vector.load %arg9[%c0_7, %c0_8] : memref<1x128xf32, #tpu.memory_space<vmem>>, vector<1x128xf32>
      %cst_9 = arith.constant dense<0.000000e+00> : vector<128xf32>
      %13 = vector.multi_reduction <add>, %2, %cst_9 [0] : vector<16x128xf32> to vector<128xf32>
      %14 = vector.shape_cast %13 : vector<128xf32> to vector<1x128xf32>
      %15 = arith.addf %12, %14 : vector<1x128xf32>
      %c0_10 = arith.constant 0 : index
      %c0_11 = arith.constant 0 : index
      %16 = vector.load %arg9[%c0_10, %c0_11] : memref<1x128xf32, #tpu.memory_space<vmem>>, vector<1x128xf32>
      tpu.vector_store %arg9[%c0_10, %c0_11], %15 {strides = array<i32>} : memref<1x128xf32, #tpu.memory_space<vmem>>, vector<1x128xf32>,
      %c0_12 = arith.constant 0 : index
      %c0_13 = arith.constant 0 : index
      %17 = vector.load %arg10[%c0_12, %c0_13] : memref<1x128xf32, #tpu.memory_space<vmem>>, vector<1x128xf32>
      %18 = arith.mulf %2, %2 : vector<16x128xf32>
      %cst_14 = arith.constant dense<0.000000e+00> : vector<128xf32>
      %19 = vector.multi_reduction <add>, %18, %cst_14 [0] : vector<16x128xf32> to vector<128xf32>
      %20 = vector.shape_cast %19 : vector<128xf32> to vector<1x128xf32>
      %21 = arith.addf %17, %20 : vector<1x128xf32>
      %c0_15 = arith.constant 0 : index
      %c0_16 = arith.constant 0 : index
      %22 = vector.load %arg10[%c0_15, %c0_16] : memref<1x128xf32, #tpu.memory_space<vmem>>, vector<1x128xf32>
      tpu.vector_store %arg10[%c0_15, %c0_16], %21 {strides = array<i32>} : memref<1x128xf32, #tpu.memory_space<vmem>>, vector<1x128xf32>,
      %c0_i32_17 = arith.constant 0 : i32
      %23 = arith.cmpi eq, %arg1, %c0_i32_17 : i32
      %24 = arith.extui %23 : i1 to i32
      %c0_i32_18 = arith.constant 0 : i32
      %25 = arith.cmpi ne, %24, %c0_i32_18 : i32
      scf.if %25 {
        %c0_19 = arith.constant 0 : index
        %c0_20 = arith.constant 0 : index
        %26 = vector.load %arg9[%c0_19, %c0_20] : memref<1x128xf32, #tpu.memory_space<vmem>>, vector<1x128xf32>
        %cst_21 = arith.constant 6.250000e-02 : f32
        %27 = vector.broadcast %cst_21 : f32 to vector<1x128xf32>
        %28 = arith.mulf %26, %27 : vector<1x128xf32>
        %c0_22 = arith.constant 0 : index
        %c0_23 = arith.constant 0 : index
        %29 = vector.load %arg10[%c0_22, %c0_23] : memref<1x128xf32, #tpu.memory_space<vmem>>, vector<1x128xf32>
        %cst_24 = arith.constant 6.250000e-02 : f32
        %30 = vector.broadcast %cst_24 : f32 to vector<1x128xf32>
        %31 = arith.mulf %29, %30 : vector<1x128xf32>
        %32 = arith.mulf %28, %28 : vector<1x128xf32>
        %33 = arith.subf %31, %32 : vector<1x128xf32>
        %c0_25 = arith.constant 0 : index
        %c0_26 = arith.constant 0 : index
        %34 = vector.load %arg4[%c0_25, %c0_26] : memref<1x128xf32, #tpu.memory_space<vmem>>, vector<1x128xf32>
        %cst_27 = arith.constant 9.99999974E-6 : f32
        %35 = vector.broadcast %cst_27 : f32 to vector<1x128xf32>
        %36 = arith.addf %33, %35 : vector<1x128xf32>
        %37 = math.rsqrt %36 : vector<1x128xf32>
        %38 = arith.mulf %34, %37 : vector<1x128xf32>
        %c0_28 = arith.constant 0 : index
        %c0_29 = arith.constant 0 : index
        %39 = vector.load %arg11[%c0_28, %c0_29] : memref<1x128xf32, #tpu.memory_space<vmem>>, vector<1x128xf32>
        tpu.vector_store %arg11[%c0_28, %c0_29], %38 {strides = array<i32>} : memref<1x128xf32, #tpu.memory_space<vmem>>, vector<1x128xf32>,
        %c0_30 = arith.constant 0 : index
        %c0_31 = arith.constant 0 : index
        %40 = vector.load %arg5[%c0_30, %c0_31] : memref<1x128xf32, #tpu.memory_space<vmem>>, vector<1x128xf32>
        %41 = arith.mulf %28, %38 : vector<1x128xf32>
        %42 = arith.subf %40, %41 : vector<1x128xf32>
        %c0_32 = arith.constant 0 : index
        %c0_33 = arith.constant 0 : index
        %43 = vector.load %arg12[%c0_32, %c0_33] : memref<1x128xf32, #tpu.memory_space<vmem>>, vector<1x128xf32>
        tpu.vector_store %arg12[%c0_32, %c0_33], %42 {strides = array<i32>} : memref<1x128xf32, #tpu.memory_space<vmem>>, vector<1x128xf32>,
      } else {
      }
    } else {
    }
    %c1_i32 = arith.constant 1 : i32
    %6 = arith.cmpi eq, %arg0, %c1_i32 : i32
    %7 = arith.extui %6 : i1 to i32
    %c0_i32_4 = arith.constant 0 : i32
    %8 = arith.cmpi ne, %7, %c0_i32_4 : i32
    scf.if %8 {
      %c0_5 = arith.constant 0 : index
      %c0_6 = arith.constant 0 : index
      %9 = vector.load %arg11[%c0_5, %c0_6] : memref<1x128xf32, #tpu.memory_space<vmem>>, vector<1x128xf32>
      %10 = vector.broadcast %9 : vector<1x128xf32> to vector<16x128xf32>
      %11 = arith.mulf %2, %10 : vector<16x128xf32>
      %c0_7 = arith.constant 0 : index
      %c0_8 = arith.constant 0 : index
      %12 = vector.load %arg12[%c0_7, %c0_8] : memref<1x128xf32, #tpu.memory_space<vmem>>, vector<1x128xf32>
      %13 = vector.broadcast %12 : vector<1x128xf32> to vector<16x128xf32>
      %14 = arith.addf %11, %13 : vector<16x128xf32>
      %cst_9 = arith.constant 0.000000e+00 : f32
      %15 = vector.broadcast %cst_9 : f32 to vector<16x128xf32>
      %16 = arith.maximumf %14, %15 : vector<16x128xf32>
      %17 = vector.shape_cast %16 : vector<16x128xf32> to vector<2x8x128xf32>
      %c0_10 = arith.constant 0 : index
      %c0_11 = arith.constant 0 : index
      %18 = vector.load %arg7[%c0_10, %c0_11] : memref<1x1xf32, #tpu.memory_space<vmem>>, vector<1x1xf32>
      %19 = vector.shape_cast %18 : vector<1x1xf32> to vector<1x1xf32>
      %20 = vector.broadcast %19 : vector<1x1xf32> to vector<2x8xf32>
      %21 = vector.extract_strided_slice %17 {offsets = [0, 0, 0], sizes = [2, 1, 128], strides = [1, 1, 1]} : vector<2x8x128xf32> to vector<2x1x128xf32>
      %22 = vector.shape_cast %21 : vector<2x1x128xf32> to vector<2x128xf32>
      %c0_12 = arith.constant 0 : index
      %c0_13 = arith.constant 0 : index
      %c0_14 = arith.constant 0 : index
      %23 = vector.load %arg6[%c0_12, %c0_13, %c0_14] : memref<8x128x8xf32, #tpu.memory_space<vmem>>, vector<1x128x8xf32>
      %24 = vector.shape_cast %23 : vector<1x128x8xf32> to vector<128x8xf32>
      %cst_15 = arith.constant dense<0.000000e+00> : vector<2x8xf32>
      %25 = tpu.matmul %22, %24, %cst_15 {dimension_numbers = #tpu.dot_dimension_numbers<[1], [0], [0], [1], [0, 0, 1, 1], [], []>} : vector<2x128xf32>, vector<128x8xf32>, vector<2x8xf32> -> vector<2x8xf32>
      %26 = arith.addf %20, %25 : vector<2x8xf32>
      %27 = vector.extract_strided_slice %17 {offsets = [0, 1, 0], sizes = [2, 1, 128], strides = [1, 1, 1]} : vector<2x8x128xf32> to vector<2x1x128xf32>
      %28 = vector.shape_cast %27 : vector<2x1x128xf32> to vector<2x128xf32>
      %c1 = arith.constant 1 : index
      %c0_16 = arith.constant 0 : index
      %c0_17 = arith.constant 0 : index
      %29 = vector.load %arg6[%c1, %c0_16, %c0_17] : memref<8x128x8xf32, #tpu.memory_space<vmem>>, vector<1x128x8xf32>
      %30 = vector.shape_cast %29 : vector<1x128x8xf32> to vector<128x8xf32>
      %cst_18 = arith.constant dense<0.000000e+00> : vector<2x8xf32>
      %31 = tpu.matmul %28, %30, %cst_18 {dimension_numbers = #tpu.dot_dimension_numbers<[1], [0], [0], [1], [0, 0, 1, 1], [], []>} : vector<2x128xf32>, vector<128x8xf32>, vector<2x8xf32> -> vector<2x8xf32>
      %32 = arith.addf %26, %31 : vector<2x8xf32>
      %33 = vector.extract_strided_slice %17 {offsets = [0, 2, 0], sizes = [2, 1, 128], strides = [1, 1, 1]} : vector<2x8x128xf32> to vector<2x1x128xf32>
      %34 = vector.shape_cast %33 : vector<2x1x128xf32> to vector<2x128xf32>
      %c2 = arith.constant 2 : index
      %c0_19 = arith.constant 0 : index
      %c0_20 = arith.constant 0 : index
      %35 = vector.load %arg6[%c2, %c0_19, %c0_20] : memref<8x128x8xf32, #tpu.memory_space<vmem>>, vector<1x128x8xf32>
      %36 = vector.shape_cast %35 : vector<1x128x8xf32> to vector<128x8xf32>
      %cst_21 = arith.constant dense<0.000000e+00> : vector<2x8xf32>
      %37 = tpu.matmul %34, %36, %cst_21 {dimension_numbers = #tpu.dot_dimension_numbers<[1], [0], [0], [1], [0, 0, 1, 1], [], []>} : vector<2x128xf32>, vector<128x8xf32>, vector<2x8xf32> -> vector<2x8xf32>
      %38 = arith.addf %32, %37 : vector<2x8xf32>
      %39 = vector.extract_strided_slice %17 {offsets = [0, 3, 0], sizes = [2, 1, 128], strides = [1, 1, 1]} : vector<2x8x128xf32> to vector<2x1x128xf32>
      %40 = vector.shape_cast %39 : vector<2x1x128xf32> to vector<2x128xf32>
      %c3 = arith.constant 3 : index
      %c0_22 = arith.constant 0 : index
      %c0_23 = arith.constant 0 : index
      %41 = vector.load %arg6[%c3, %c0_22, %c0_23] : memref<8x128x8xf32, #tpu.memory_space<vmem>>, vector<1x128x8xf32>
      %42 = vector.shape_cast %41 : vector<1x128x8xf32> to vector<128x8xf32>
      %cst_24 = arith.constant dense<0.000000e+00> : vector<2x8xf32>
      %43 = tpu.matmul %40, %42, %cst_24 {dimension_numbers = #tpu.dot_dimension_numbers<[1], [0], [0], [1], [0, 0, 1, 1], [], []>} : vector<2x128xf32>, vector<128x8xf32>, vector<2x8xf32> -> vector<2x8xf32>
      %44 = arith.addf %38, %43 : vector<2x8xf32>
      %45 = vector.extract_strided_slice %17 {offsets = [0, 4, 0], sizes = [2, 1, 128], strides = [1, 1, 1]} : vector<2x8x128xf32> to vector<2x1x128xf32>
      %46 = vector.shape_cast %45 : vector<2x1x128xf32> to vector<2x128xf32>
      %c4 = arith.constant 4 : index
      %c0_25 = arith.constant 0 : index
      %c0_26 = arith.constant 0 : index
      %47 = vector.load %arg6[%c4, %c0_25, %c0_26] : memref<8x128x8xf32, #tpu.memory_space<vmem>>, vector<1x128x8xf32>
      %48 = vector.shape_cast %47 : vector<1x128x8xf32> to vector<128x8xf32>
      %cst_27 = arith.constant dense<0.000000e+00> : vector<2x8xf32>
      %49 = tpu.matmul %46, %48, %cst_27 {dimension_numbers = #tpu.dot_dimension_numbers<[1], [0], [0], [1], [0, 0, 1, 1], [], []>} : vector<2x128xf32>, vector<128x8xf32>, vector<2x8xf32> -> vector<2x8xf32>
      %50 = arith.addf %44, %49 : vector<2x8xf32>
      %51 = vector.extract_strided_slice %17 {offsets = [0, 5, 0], sizes = [2, 1, 128], strides = [1, 1, 1]} : vector<2x8x128xf32> to vector<2x1x128xf32>
      %52 = vector.shape_cast %51 : vector<2x1x128xf32> to vector<2x128xf32>
      %c5 = arith.constant 5 : index
      %c0_28 = arith.constant 0 : index
      %c0_29 = arith.constant 0 : index
      %53 = vector.load %arg6[%c5, %c0_28, %c0_29] : memref<8x128x8xf32, #tpu.memory_space<vmem>>, vector<1x128x8xf32>
      %54 = vector.shape_cast %53 : vector<1x128x8xf32> to vector<128x8xf32>
      %cst_30 = arith.constant dense<0.000000e+00> : vector<2x8xf32>
      %55 = tpu.matmul %52, %54, %cst_30 {dimension_numbers = #tpu.dot_dimension_numbers<[1], [0], [0], [1], [0, 0, 1, 1], [], []>} : vector<2x128xf32>, vector<128x8xf32>, vector<2x8xf32> -> vector<2x8xf32>
      %56 = arith.addf %50, %55 : vector<2x8xf32>
      %57 = vector.extract_strided_slice %17 {offsets = [0, 6, 0], sizes = [2, 1, 128], strides = [1, 1, 1]} : vector<2x8x128xf32> to vector<2x1x128xf32>
      %58 = vector.shape_cast %57 : vector<2x1x128xf32> to vector<2x128xf32>
      %c6 = arith.constant 6 : index
      %c0_31 = arith.constant 0 : index
      %c0_32 = arith.constant 0 : index
      %59 = vector.load %arg6[%c6, %c0_31, %c0_32] : memref<8x128x8xf32, #tpu.memory_space<vmem>>, vector<1x128x8xf32>
      %60 = vector.shape_cast %59 : vector<1x128x8xf32> to vector<128x8xf32>
      %cst_33 = arith.constant dense<0.000000e+00> : vector<2x8xf32>
      %61 = tpu.matmul %58, %60, %cst_33 {dimension_numbers = #tpu.dot_dimension_numbers<[1], [0], [0], [1], [0, 0, 1, 1], [], []>} : vector<2x128xf32>, vector<128x8xf32>, vector<2x8xf32> -> vector<2x8xf32>
      %62 = arith.addf %56, %61 : vector<2x8xf32>
      %63 = vector.extract_strided_slice %17 {offsets = [0, 7, 0], sizes = [2, 1, 128], strides = [1, 1, 1]} : vector<2x8x128xf32> to vector<2x1x128xf32>
      %64 = vector.shape_cast %63 : vector<2x1x128xf32> to vector<2x128xf32>
      %c7 = arith.constant 7 : index
      %c0_34 = arith.constant 0 : index
      %c0_35 = arith.constant 0 : index
      %65 = vector.load %arg6[%c7, %c0_34, %c0_35] : memref<8x128x8xf32, #tpu.memory_space<vmem>>, vector<1x128x8xf32>
      %66 = vector.shape_cast %65 : vector<1x128x8xf32> to vector<128x8xf32>
      %cst_36 = arith.constant dense<0.000000e+00> : vector<2x8xf32>
      %67 = tpu.matmul %64, %66, %cst_36 {dimension_numbers = #tpu.dot_dimension_numbers<[1], [0], [0], [1], [0, 0, 1, 1], [], []>} : vector<2x128xf32>, vector<128x8xf32>, vector<2x8xf32> -> vector<2x8xf32>
      %68 = arith.addf %62, %67 : vector<2x8xf32>
      %69 = arith.negf %68 : vector<2x8xf32>
      %70 = math.exp %69 : vector<2x8xf32>
      %cst_37 = arith.constant 1.000000e+00 : f32
      %71 = vector.broadcast %cst_37 : f32 to vector<2x8xf32>
      %72 = arith.addf %71, %70 : vector<2x8xf32>
      %73 = arith.divf %71, %72 : vector<2x8xf32>
      %c0_38 = arith.constant 0 : index
      %c0_39 = arith.constant 0 : index
      %74 = vector.load %arg8[%c0_38, %c0_39] : memref<2x8xf32, #tpu.memory_space<vmem>>, vector<2x8xf32>
      tpu.vector_store %arg8[%c0_38, %c0_39], %73 {strides = array<i32>} : memref<2x8xf32, #tpu.memory_space<vmem>>, vector<2x8xf32>,
    } else {
    }
    return
  }
  func.func @transform_0(%arg0: i32, %arg1: i32) -> (i32, i32) {
    %c0_i32 = arith.constant 0 : i32
    %c0_i32_0 = arith.constant 0 : i32
    return %arg1, %c0_i32 : i32, i32
  }
  func.func @transform_1(%arg0: i32, %arg1: i32) -> (i32, i32) {
    %c0_i32 = arith.constant 0 : i32
    %c0_i32_0 = arith.constant 0 : i32
    %c0_i32_1 = arith.constant 0 : i32
    return %c0_i32, %c0_i32_0 : i32, i32
  }
  func.func @transform_2(%arg0: i32, %arg1: i32) -> (i32, i32) {
    %c0_i32 = arith.constant 0 : i32
    %c0_i32_0 = arith.constant 0 : i32
    %c0_i32_1 = arith.constant 0 : i32
    return %c0_i32, %c0_i32_0 : i32, i32
  }
  func.func @transform_3(%arg0: i32, %arg1: i32) -> (i32, i32) {
    %c0_i32 = arith.constant 0 : i32
    %c0_i32_0 = arith.constant 0 : i32
    %c0_i32_1 = arith.constant 0 : i32
    return %c0_i32, %c0_i32_0 : i32, i32
  }
  func.func @transform_4(%arg0: i32, %arg1: i32) -> (i32, i32, i32) {
    %c0_i32 = arith.constant 0 : i32
    %c0_i32_0 = arith.constant 0 : i32
    %c0_i32_1 = arith.constant 0 : i32
    %c0_i32_2 = arith.constant 0 : i32
    return %c0_i32, %c0_i32_0, %c0_i32_1 : i32, i32, i32
  }
  func.func @transform_5(%arg0: i32, %arg1: i32) -> (i32, i32) {
    %c0_i32 = arith.constant 0 : i32
    %c0_i32_0 = arith.constant 0 : i32
    %c0_i32_1 = arith.constant 0 : i32
    return %c0_i32, %c0_i32_0 : i32, i32
  }
  func.func @transform_6(%arg0: i32, %arg1: i32) -> (i32, i32) {
    %c0_i32 = arith.constant 0 : i32
    %c0_i32_0 = arith.constant 0 : i32
    return %arg1, %c0_i32 : i32, i32
  }
}

</mosaic_0001>

<bundles_post_ra>
// kernel: cnn_model_forward.1
= control target key start
LH: loop header
LB: loop body
LE: loop exit
PB: predicated region body
PF: predicated region fallthrough
CT: control target
= control target key end

     0   :  { %s1897_s23 = smov 0   ;;  %s1899_s24 = smov 0   ;;  %s2529_s0 = inlined_call_operand.vmem [shape: f32[16,16], index: 0, kind: input, shape index: {}]   ;;  %s2530_s1 = inlined_call_operand.vmem [shape: f32[16,128], index: 1, kind: input, shape index: {}]   ;;  %s2531_s2 = inlined_call_operand.vmem [shape: f32[1,128], index: 2, kind: input, shape index: {}]   ;;  %s2532_s3 = inlined_call_operand.vmem [shape: f32[1,128], index: 3, kind: input, shape index: {}]   ;;  %s2533_s4 = inlined_call_operand.vmem [shape: f32[8,128,8], index: 4, kind: input, shape index: {}]   ;;  %s2534_s5 = inlined_call_operand.<no memory space> [shape: f32[1,1], index: 5, kind: input, shape index: {}]   ;;  %s2535_s6 = inlined_call_operand.vmem [shape: f32[2,8], index: 6, kind: output, shape index: {}]  }
   0x1   :  { %v11_v0 = vstv %s2534_s5  ;;  %s1901_s25 = smov 0  }
   0x2   :  { %12 = vst [vmem:[#allocation6] sm:$0x1] %v11_v0 }
   0x3 LB: > { %s30_s5 = sadd.s32 1, %s1849_s24  ;;  %p1245_p0 = scmp.ge.s32.totalorder %s1853_s25, 1  ;;  %s1853_s25 = sphi %s1901_s25, %s18_s25   ;;  %s1849_s24 = sphi %s1899_s24, %s2537_s24   ;;  %s1845_s23 = sphi %s1897_s23, %s2536_s23  }
   0x4   : > { %p32_p1 = scmp.ge.s32.totalorder %s30_s5, 2  ;;  %p227_p2 = scmp.lt.s32.totalorder %s1853_s25, 3 }
   0x6   : > { %s2539_s5 = smov (%p32_p1, %s30_s5), 0  ;;  %p228_p3 = pnand %p1245_p0, %p227_p2 }
   0x7   : > { %p1248_p4 = scmp.ne.s32.totalorder (!%p228_p3), %s1845_s23, 0 }
   0x8   : > { %231 = sbr.rel (%p228_p3) target bundleno = 640 (0x280), region = 44 }
   0xd   : > { %v269_v1 = vld [vmem:[%s2530_s1 + $0x8] sm:$0xff]  ;;  %v268_v2 = vld [vmem:[%s2530_s1] sm:$0xff]  ;;  %vm270_vm0 = vcmask 130048  }
   0xe   : > { %v266_v3 = vld [vmem:[%s2529_s0] sm:$0xff]  ;;  %1509 = vmatprep.subr.mxu0 %v269_v1  ;;  %v267_v4 = vld [vmem:[%s2529_s0 + $0x8] sm:$0xff] }
   0xf   : > { %1513 = vmatprep.mubr.msk.f32.mxu0 %vm270_vm0, %v266_v3  ;;  %1510 = vmatpush3.msra.mxu0 %v269_v1 }
  0x10   : > { %1511 = vmatprep.subr.mxu0 %v268_v2 }
  0x11   : > { %1512 = vmatpush3.msra.mxu0 %v268_v2 }
  0x12   : > { %1514 = vmatmul.mubr.msk.f32.vlgmr.msra.gmra.mxu0 %vm270_vm0, %v267_v4 }
  0xd0   : > { %355 = sbr.rel (%p1248_p4) target bundleno = 266 (0x10a), region = 48 }
  0xd2   : > { %v1929_v5 = vpop.f32.mrf.mxu0 }
  0xd4   : > { %v1931_v6 = vpop.f32.mrf.mxu0 }
  0xd5   : > { %v363_v7 = vadd.f32 %v1929_v5, %v1931_v6  ;;  %v373_v8 = vmul.f32 %v1931_v6, %v1931_v6  ;;  %v374_v9 = vmul.f32 %v1929_v5, %v1929_v5  ;;  %v1855_v10 = vmov 0.0   ;;  %v393_v35 = vld [vmem:[%s2531_s2] sm:$0x1] }
  0xd6   : > { %360 = vst [vmem:[#allocation2] sm:$0x1] %v1855_v10  ;;  %361 = vst [vmem:[#allocation3] sm:$0x1] %v1855_v10  ;;  %v398_v38 = vld [vmem:[%s2532_s3] sm:$0x1] }
  0xd7   : > { %v364_v11 = vrot.slane %v363_v7, 4  ;;  %v375_v12 = vadd.f32 %v374_v9, %v373_v8 }
  0xd9   : > { %v365_v13 = vadd.f32 %v364_v11, %v363_v7  ;;  %v376_v14 = vrot.slane %v375_v12, 4 }
  0xdb   : > { %v366_v15 = vrot.slane %v365_v13, 2  ;;  %v377_v16 = vadd.f32 %v376_v14, %v375_v12 }
  0xdd   : > { %v367_v17 = vadd.f32 %v366_v15, %v365_v13  ;;  %v378_v18 = vrot.slane %v377_v16, 2  ;;  %v362_v21 = vld [vmem:[#allocation2] sm:$0x1]  ;;  %v372_v24 = vld [vmem:[#allocation3] sm:$0x1] }
  0xdf   : > { %v368_v19 = vrot.slane %v367_v17, 1  ;;  %v379_v20 = vadd.f32 %v378_v18, %v377_v16 }
  0xe1   : > { %v369_v22 = vadd.f32 %v368_v19, %v367_v17  ;;  %v380_v23 = vrot.slane %v379_v20, 1 }
  0xe3   : > { %v370_v25 = vadd.f32 %v369_v22, %v362_v21  ;;  %v381_v26 = vadd.f32 %v380_v23, %v379_v20 }
  0xe5   : > { %371 = vst [vmem:[#allocation2] sm:$0x1] %v370_v25  ;;  %v382_v27 = vadd.f32 %v381_v26, %v372_v24 }
  0xe7   : > { %383 = vst [vmem:[#allocation3] sm:$0x1] %v382_v27 }
  0xec   : > { %v387_v28 = vld [vmem:[#allocation2] sm:$0x1] }
  0xed   : > { %v388_v29 = vmul.f32 0.0625, %v387_v28 }
  0xee   : > { %v389_v30 = vld [vmem:[#allocation3] sm:$0x1] }
  0xef   : > { %v390_v31 = vmul.f32 0.0625, %v389_v30  ;;  %v391_v32 = vmul.f32 %v388_v29, %v388_v29 }
  0xf1   : > { %v392_v33 = vsub.f32 %v390_v31, %v391_v32 }
  0xf3   : > { %v394_v34 = vadd.f32 1e-05, %v392_v33 }
  0xf5   : > { %1824 = vrsqrt.f32 %v394_v34 }
 0x102   : > { %v1825_v36 = vpop.eup %1824 }
 0x103   : > { %v396_v37 = vmul.f32 %v1825_v36, %v393_v35 }
 0x105   : > { %397 = vst [vmem:[#allocation4] sm:$0x1] %v396_v37  ;;  %v399_v39 = vmul.f32 %v396_v37, %v388_v29 }
 0x107   : > { %v400_v40 = vsub.f32 %v398_v38, %v399_v39 }
 0x109   : > { %401 = vst [vmem:[#allocation5] sm:$0x1] %v400_v40 }
 0x10a PF: > { %p1249_p5 = scmp.ne.s32.totalorder %s1845_s23, 1 }
 0x10c   : > { %405 = sbr.rel (%p1249_p5) target bundleno = 640 (0x280), region = 60 }
 0x111   : > { %v451_v41 = vld [vmem:[%s2533_s4 + $0x78] sm:$0xff]  ;;  %v1856_v43 = vmov 0.0   ;;  %v450_v44 = vld [vmem:[%s2533_s4 + $0x70] sm:$0xff]  ;;  %v449_v46 = vld [vmem:[%s2533_s4 + $0x68] sm:$0xff]  ;;  %vm455_vm1 = vcmask 1041409   ;;  %vm1857_vm2 = vmmov 0  }
 0x112   : > { %v1268_v42 = vld [vmem:[%s2533_s4 + $0xf8] sm:$0xff]  ;;  %1516 = vmatprep.subr.mxu0 %v1856_v43  ;;  %1551 = vmatprep.subr.mxu1 %v1856_v43  ;;  %v1267_v45 = vld [vmem:[%s2533_s4 + $0xf0] sm:$0xff]  ;;  %v1266_v47 = vld [vmem:[%s2533_s4 + $0xe8] sm:$0xff]  ;;  %vm1178_vm3 = vcmask 58368  }
 0x113   : > { %1517 = vmatpush3.msra.mxu0 %v451_v41  ;;  %1552 = vmatpush3.msra.mxu1 %v1268_v42  ;;  %v448_v48 = vld [vmem:[%s2533_s4 + $0x60] sm:$0xff]  ;;  %v447_v50 = vld [vmem:[%s2533_s4 + $0x58] sm:$0xff]  ;;  %v446_v52 = vld [vmem:[%s2533_s4 + $0x50] sm:$0xff] }
 0x114   : > { %1518 = vmatprep.subr.mxu0 %v1856_v43  ;;  %1553 = vmatprep.subr.mxu1 %v1856_v43  ;;  %v1265_v49 = vld [vmem:[%s2533_s4 + $0xe0] sm:$0xff]  ;;  %v1264_v51 = vld [vmem:[%s2533_s4 + $0xd8] sm:$0xff]  ;;  %v1263_v53 = vld [vmem:[%s2533_s4 + $0xd0] sm:$0xff] }
 0x115   : > { %1519 = vmatpush3.msra.mxu0 %v450_v44  ;;  %1554 = vmatpush3.msra.mxu1 %v1267_v45  ;;  %v1250_v54 = vld [vmem:[#allocation4] ss:$0 sm:$0xff]  ;;  %v445_v55 = vld [vmem:[%s2533_s4 + $0x48] sm:$0xff]  ;;  %v1251_v59 = vld [vmem:[#allocation5] ss:$0 sm:$0xff] }
 0x116   : > { %1520 = vmatprep.subr.mxu0 %v1856_v43  ;;  %1555 = vmatprep.subr.mxu1 %v1856_v43  ;;  %v1262_v56 = vld [vmem:[%s2533_s4 + $0xc8] sm:$0xff]  ;;  %v413_v57 = vmul.f32 %v1250_v54, %v1931_v6  ;;  %v414_v58 = vmul.f32 %v1929_v5, %v1250_v54  ;;  %v444_v60 = vld [vmem:[%s2533_s4 + $0x40] sm:$0xff]  ;;  %v443_v0 = vld [vmem:[%s2533_s4 + $0x38] sm:$0xff] }
 0x117   : > { %1521 = vmatpush3.msra.mxu0 %v449_v46  ;;  %1556 = vmatpush3.msra.mxu1 %v1266_v47  ;;  %v1261_v61 = vld [vmem:[%s2533_s4 + $0xc0] sm:$0xff]  ;;  %v1260_v1 = vld [vmem:[%s2533_s4 + $0xb8] sm:$0xff]  ;;  %v442_v2 = vld [vmem:[%s2533_s4 + $0x30] sm:$0xff] }
 0x118   : > { %1522 = vmatprep.subr.mxu0 %v1856_v43  ;;  %1557 = vmatprep.subr.mxu1 %v1856_v43  ;;  %v422_v62 = vadd.f32 %v1251_v59, %v413_v57  ;;  %v423_v63 = vadd.f32 %v1251_v59, %v414_v58  ;;  %v1259_v3 = vld [vmem:[%s2533_s4 + $0xb0] sm:$0xff]  ;;  %v441_v6 = vld [vmem:[%s2533_s4 + $0x28] sm:$0xff]  ;;  %v440_v12 = vld [vmem:[%s2533_s4 + $0x20] sm:$0xff] }
 0x119   : > { %1523 = vmatpush3.msra.mxu0 %v448_v48  ;;  %1558 = vmatpush3.msra.mxu1 %v1265_v49  ;;  %v1258_v7 = vld [vmem:[%s2533_s4 + $0xa8] sm:$0xff]  ;;  %v1257_v13 = vld [vmem:[%s2533_s4 + $0xa0] sm:$0xff]  ;;  %v439_v20 = vld [vmem:[%s2533_s4 + $0x18] sm:$0xff] }
 0x11a   : > { %1524 = vmatprep.subr.mxu0 %v1856_v43  ;;  %1559 = vmatprep.subr.mxu1 %v1856_v43  ;;  %v2027_v4 = vmax.f32 %v422_v62, 0.0  ;;  %v2029_v5 = vmax.f32 %v423_v63, 0.0  ;;  %v1256_v21 = vld [vmem:[%s2533_s4 + $0x98] sm:$0xff]  ;;  %v438_v24 = vld [vmem:[%s2533_s4 + $0x10] sm:$0xff]  ;;  %v437_v27 = vld [vmem:[%s2533_s4 + $0x8] sm:$0xff] }
 0x11b   : > { %1525 = vmatpush3.msra.mxu0 %v447_v50  ;;  %1560 = vmatpush3.msra.mxu1 %v1264_v51  ;;  %v1255_v25 = vld [vmem:[%s2533_s4 + $0x90] sm:$0xff]  ;;  %v1254_v28 = vld [vmem:[%s2533_s4 + $0x88] sm:$0xff]  ;;  %v436_v30 = vld [vmem:[%s2533_s4] sm:$0xff] }
 0x11c   : > { %1526 = vmatprep.subr.mxu0 %v1856_v43  ;;  %1561 = vmatprep.subr.mxu1 %v1856_v43  ;;  %v821_v8 = vrot.slane %v2027_v4, 4  ;;  %v822_v9 = vrot.slane %v2029_v5, 3  ;;  %v913_v10 = vrot.slane %v2027_v4, 5  ;;  %v914_v11 = vrot.slane %v2029_v5, 4  ;;  %v1253_v31 = vld [vmem:[%s2533_s4 + $0x80] sm:$0xff]  ;;  %v1284_v34 = vld [vmem:[%s2533_s4 + $0x178] sm:$0xff] }
 0x11d   : > { %1527 = vmatpush3.msra.mxu0 %v446_v52  ;;  %1562 = vmatpush3.msra.mxu1 %v1263_v53  ;;  %v1005_v15 = vrot.slane %v2027_v4, 6  ;;  %v1006_v16 = vrot.slane %v2029_v5, 5  ;;  %v1097_v17 = vrot.slane %v2027_v4, 7  ;;  %v1098_v19 = vrot.slane %v2029_v5, 6  ;;  %v1300_v35 = vld [vmem:[%s2533_s4 + $0x1f8] sm:$0xff]  ;;  %v1283_v36 = vld [vmem:[%s2533_s4 + $0x170] sm:$0xff] }
 0x11e   : > { %1528 = vmatprep.subr.mxu0 %v1856_v43  ;;  %1563 = vmatprep.subr.mxu1 %v1856_v43  ;;  %v2052_v14 = vsel %vm455_vm1, %v822_v9, %v821_v8  ;;  %v2058_v18 = vsel %vm455_vm1, %v914_v11, %v913_v10  ;;  %v454_v26 = vrot.slane %v2029_v5, 7  ;;  %v546_v29 = vrot.slane %v2027_v4, 1  ;;  %v1299_v37 = vld [vmem:[%s2533_s4 + $0x1f0] sm:$0xff]  ;;  %v1282_v38 = vld [vmem:[%s2533_s4 + $0x168] sm:$0xff]  ;;  %v1281_v40 = vld [vmem:[%s2533_s4 + $0x160] sm:$0xff] }
 0x11f   : > { %1529 = vmatpush3.msra.mxu0 %v445_v55  ;;  %1564 = vmatpush3.msra.mxu1 %v1262_v56  ;;  %v2070_v22 = vsel %vm455_vm1, %v1006_v16, %v1005_v15  ;;  %v2073_v23 = vsel %vm455_vm1, %v1098_v19, %v1097_v17  ;;  %v1298_v39 = vld [vmem:[%s2533_s4 + $0x1e8] sm:$0xff]  ;;  %v1297_v41 = vld [vmem:[%s2533_s4 + $0x1e0] sm:$0xff]  ;;  %v1280_v42 = vld [vmem:[%s2533_s4 + $0x158] sm:$0xff]  ;;  %v637_v63 = vrot.slane %v2027_v4, 2 }
 0x120   : > { %1530 = vmatprep.subr.mxu0 %v1856_v43  ;;  %1565 = vmatprep.subr.mxu1 %v1856_v43  ;;  %v456_v32 = vsel %vm455_vm1, %v454_v26, %v2027_v4  ;;  %v547_v33 = vsel %vm455_vm1, %v2029_v5, %v546_v29  ;;  %v1296_v44 = vld [vmem:[%s2533_s4 + $0x1d8] sm:$0xff]  ;;  %v1279_v45 = vld [vmem:[%s2533_s4 + $0x150] sm:$0xff]  ;;  %v1278_v47 = vld [vmem:[%s2533_s4 + $0x148] sm:$0xff] }
 0x121   : > { %1531 = vmatpush3.msra.mxu0 %v444_v60  ;;  %1566 = vmatpush3.msra.mxu1 %v1261_v61  ;;  %v1295_v46 = vld [vmem:[%s2533_s4 + $0x1d0] sm:$0xff]  ;;  %v1294_v48 = vld [vmem:[%s2533_s4 + $0x1c8] sm:$0xff]  ;;  %v1277_v49 = vld [vmem:[%s2533_s4 + $0x140] sm:$0xff] }
 0x122   : > { %1532 = vmatprep.subr.mxu0 %v1856_v43  ;;  %1567 = vmatprep.subr.mxu1 %v1856_v43  ;;  %v1293_v50 = vld [vmem:[%s2533_s4 + $0x1c0] sm:$0xff]  ;;  %v1276_v51 = vld [vmem:[%s2533_s4 + $0x138] sm:$0xff]  ;;  %v1275_v53 = vld [vmem:[%s2533_s4 + $0x130] sm:$0xff] }
 0x123   : > { %1533 = vmatpush3.msra.mxu0 %v443_v0  ;;  %1568 = vmatpush3.msra.mxu1 %v1260_v1  ;;  %v1292_v52 = vld [vmem:[%s2533_s4 + $0x1b8] sm:$0xff]  ;;  %v1291_v54 = vld [vmem:[%s2533_s4 + $0x1b0] sm:$0xff]  ;;  %v1274_v55 = vld [vmem:[%s2533_s4 + $0x128] sm:$0xff]  ;;  %v638_v0 = vrot.slane %v2029_v5, 1 }
 0x124   : > { %1534 = vmatprep.subr.mxu0 %v1856_v43  ;;  %1569 = vmatprep.subr.mxu1 %v1856_v43  ;;  %v1290_v56 = vld [vmem:[%s2533_s4 + $0x1a8] sm:$0xff]  ;;  %v1273_v57 = vld [vmem:[%s2533_s4 + $0x120] sm:$0xff]  ;;  %v1272_v59 = vld [vmem:[%s2533_s4 + $0x118] sm:$0xff] }
 0x125   : > { %1535 = vmatpush3.msra.mxu0 %v442_v2  ;;  %1570 = vmatpush3.msra.mxu1 %v1259_v3  ;;  %v1289_v58 = vld [vmem:[%s2533_s4 + $0x1a0] sm:$0xff]  ;;  %v1288_v60 = vld [vmem:[%s2533_s4 + $0x198] sm:$0xff]  ;;  %v1271_v61 = vld [vmem:[%s2533_s4 + $0x110] sm:$0xff]  ;;  %v729_v3 = vrot.slane %v2027_v4, 3  ;;  %v639_v9 = vsel %vm455_vm1, %v638_v0, %v637_v63 }
 0x126   : > { %1536 = vmatprep.subr.mxu0 %v1856_v43  ;;  %1571 = vmatprep.subr.mxu1 %v1856_v43  ;;  %v1287_v62 = vld [vmem:[%s2533_s4 + $0x190] sm:$0xff]  ;;  %v1270_v1 = vld [vmem:[%s2533_s4 + $0x108] sm:$0xff]  ;;  %v1285_v8 = vld [vmem:[%s2533_s4 + $0x180] sm:$0xff] }
 0x127   : > { %1537 = vmatpush3.msra.mxu0 %v441_v6  ;;  %1572 = vmatpush3.msra.mxu1 %v1258_v7  ;;  %v1286_v2 = vld [vmem:[%s2533_s4 + $0x188] sm:$0xff]  ;;  %v730_v6 = vrot.slane %v2029_v5, 2  ;;  %v1269_v7 = vld [vmem:[%s2533_s4 + $0x100] sm:$0xff]  ;;  %v1316_v5 = vld [vmem:[%s2533_s4 + $0x278] sm:$0xff] }
 0x128   : > { %1538 = vmatprep.subr.mxu0 %v1856_v43  ;;  %1573 = vmatprep.subr.mxu1 %v1856_v43  ;;  %v1332_v10 = vld [vmem:[%s2533_s4 + $0x2f8] sm:$0xff]  ;;  %v1315_v11 = vld [vmem:[%s2533_s4 + $0x270] sm:$0xff]  ;;  %v1330_v15 = vld [vmem:[%s2533_s4 + $0x2e8] sm:$0xff] }
 0x129   : > { %1539 = vmatpush3.msra.mxu0 %v440_v12  ;;  %1574 = vmatpush3.msra.mxu1 %v1257_v13  ;;  %v731_v4 = vsel %vm455_vm1, %v730_v6, %v729_v3  ;;  %v1331_v12 = vld [vmem:[%s2533_s4 + $0x2f0] sm:$0xff]  ;;  %v1314_v13 = vld [vmem:[%s2533_s4 + $0x268] sm:$0xff]  ;;  %v1313_v16 = vld [vmem:[%s2533_s4 + $0x260] sm:$0xff] }
 0x12a   : > { %1540 = vmatprep.subr.mxu0 %v1856_v43  ;;  %1575 = vmatprep.subr.mxu1 %v1856_v43  ;;  %v1329_v17 = vld [vmem:[%s2533_s4 + $0x2e0] sm:$0xff]  ;;  %v1312_v19 = vld [vmem:[%s2533_s4 + $0x258] sm:$0xff]  ;;  %v1326_v26 = vld [vmem:[%s2533_s4 + $0x2c8] sm:$0xff] }
 0x12b   : > { %1541 = vmatpush3.msra.mxu0 %v439_v20  ;;  %1576 = vmatpush3.msra.mxu1 %v1256_v21  ;;  %v1328_v20 = vld [vmem:[%s2533_s4 + $0x2d8] sm:$0xff]  ;;  %v1311_v21 = vld [vmem:[%s2533_s4 + $0x250] sm:$0xff]  ;;  %v1354_v3 = vld [vmem:[%s2533_s4 + $0x3a8] sm:$0xff] }
 0x12c   : > { %1542 = vmatprep.subr.mxu0 %v1856_v43  ;;  %1577 = vmatprep.subr.mxu1 %v1856_v43  ;;  %v1308_v29 = vld [vmem:[%s2533_s4 + $0x238] sm:$0xff]  ;;  %v1339_v0 = vld [vmem:[%s2533_s4 + $0x330] sm:$0xff]  ;;  %v1337_v6 = vld [vmem:[%s2533_s4 + $0x320] sm:$0xff] }
 0x12d   : > { %1543 = vmatpush3.msra.mxu0 %v438_v24  ;;  %1578 = vmatpush3.msra.mxu1 %v1255_v25  ;;  %v1327_v24 = vld [vmem:[%s2533_s4 + $0x2d0] sm:$0xff]  ;;  %v1310_v25 = vld [vmem:[%s2533_s4 + $0x248] sm:$0xff]  ;;  %v1356_v63 = vld [vmem:[%s2533_s4 + $0x3b8] sm:$0xff] }
 0x12e   : > { %1544 = vmatprep.subr.mxu0 %v1856_v43  ;;  %1579 = vmatprep.subr.mxu1 %v1856_v43 }
 0x12f   : > { %1545 = vmatpush3.msra.mxu0 %v437_v27  ;;  %1580 = vmatpush3.msra.mxu1 %v1254_v28  ;;  %v1309_v27 = vld [vmem:[%s2533_s4 + $0x240] sm:$0xff] }
 0x130   : > { %1546 = vmatprep.subr.mxu0 %v1856_v43  ;;  %1581 = vmatprep.subr.mxu1 %v1856_v43  ;;  %v1325_v28 = vld [vmem:[%s2533_s4 + $0x2c0] sm:$0xff] }
 0x131   : > { %1547 = vmatpush3.msra.mxu0 %v436_v30  ;;  %1548 = vmatprep.mubr.msk.f32.mxu0 %vm1857_vm2, %v1856_v43  ;;  %v1324_v30 = vld [vmem:[%s2533_s4 + $0x2b8] sm:$0xff] }
 0x132   : > { %1582 = vmatpush3.msra.mxu1 %v1253_v31  ;;  %1549 = vmatmul.mubr.f32.vlgmr.msra.gmra.mxu0 %v456_v32  ;;  %v1307_v31 = vld [vmem:[%s2533_s4 + $0x230] sm:$0xff] }
 0x133   : > { %1583 = vmatprep.mubr.msk.f32.mxu1 %vm1857_vm2, %v1856_v43  ;;  %1586 = vmatprep.subr.mxu0 %v1856_v43  ;;  %v1323_v32 = vld [vmem:[%s2533_s4 + $0x2b0] sm:$0xff] }
 0x134   : > { %1621 = vmatprep.subr.mxu1 %v1856_v43  ;;  %1584 = vmatmul.mubr.f32.vlgmr.msra.gmra.mxu1 %v547_v33  ;;  %v1306_v33 = vld [vmem:[%s2533_s4 + $0x228] sm:$0xff] }
 0x135   : > { %1587 = vmatpush3.msra.mxu0 %v1284_v34  ;;  %1622 = vmatpush3.msra.mxu1 %v1300_v35  ;;  %v1322_v34 = vld [vmem:[%s2533_s4 + $0x2a8] sm:$0xff]  ;;  %v1305_v35 = vld [vmem:[%s2533_s4 + $0x220] sm:$0xff] }
 0x136   : > { %1588 = vmatprep.subr.mxu0 %v1856_v43  ;;  %1623 = vmatprep.subr.mxu1 %v1856_v43 }
 0x137   : > { %1589 = vmatpush3.msra.mxu0 %v1283_v36  ;;  %1624 = vmatpush3.msra.mxu1 %v1299_v37  ;;  %v1321_v36 = vld [vmem:[%s2533_s4 + $0x2a0] sm:$0xff]  ;;  %v1304_v37 = vld [vmem:[%s2533_s4 + $0x218] sm:$0xff] }
 0x138   : > { %1590 = vmatprep.subr.mxu0 %v1856_v43  ;;  %1625 = vmatprep.subr.mxu1 %v1856_v43 }
 0x139   : > { %1591 = vmatpush3.msra.mxu0 %v1282_v38  ;;  %1626 = vmatpush3.msra.mxu1 %v1298_v39  ;;  %v1320_v38 = vld [vmem:[%s2533_s4 + $0x298] sm:$0xff]  ;;  %v1303_v39 = vld [vmem:[%s2533_s4 + $0x210] sm:$0xff] }
 0x13a   : > { %1592 = vmatprep.subr.mxu0 %v1856_v43  ;;  %1627 = vmatprep.subr.mxu1 %v1856_v43 }
 0x13b   : > { %1593 = vmatpush3.msra.mxu0 %v1281_v40  ;;  %1628 = vmatpush3.msra.mxu1 %v1297_v41  ;;  %v1319_v40 = vld [vmem:[%s2533_s4 + $0x290] sm:$0xff]  ;;  %v1302_v41 = vld [vmem:[%s2533_s4 + $0x208] sm:$0xff] }
 0x13c   : > { %1594 = vmatprep.subr.mxu0 %v1856_v43  ;;  %1629 = vmatprep.subr.mxu1 %v1856_v43 }
 0x13d   : > { %1595 = vmatpush3.msra.mxu0 %v1280_v42  ;;  %1630 = vmatpush3.msra.mxu1 %v1296_v44  ;;  %v1318_v42 = vld [vmem:[%s2533_s4 + $0x288] sm:$0xff]  ;;  %v1301_v44 = vld [vmem:[%s2533_s4 + $0x200] sm:$0xff] }
 0x13e   : > { %1596 = vmatprep.subr.mxu0 %v1856_v43  ;;  %1631 = vmatprep.subr.mxu1 %v1856_v43 }
 0x13f   : > { %1597 = vmatpush3.msra.mxu0 %v1279_v45  ;;  %1632 = vmatpush3.msra.mxu1 %v1295_v46  ;;  %v1317_v45 = vld [vmem:[%s2533_s4 + $0x280] sm:$0xff]  ;;  %v1348_v46 = vld [vmem:[%s2533_s4 + $0x378] sm:$0xff] }
 0x140   : > { %1598 = vmatprep.subr.mxu0 %v1856_v43  ;;  %1633 = vmatprep.subr.mxu1 %v1856_v43 }
 0x141   : > { %1599 = vmatpush3.msra.mxu0 %v1278_v47  ;;  %1634 = vmatpush3.msra.mxu1 %v1294_v48  ;;  %v1364_v47 = vld [vmem:[%s2533_s4 + $0x3f8] sm:$0xff]  ;;  %v1363_v48 = vld [vmem:[%s2533_s4 + $0x3f0] sm:$0xff] }
 0x142   : > { %1600 = vmatprep.subr.mxu0 %v1856_v43  ;;  %1635 = vmatprep.subr.mxu1 %v1856_v43 }
 0x143   : > { %1601 = vmatpush3.msra.mxu0 %v1277_v49  ;;  %1636 = vmatpush3.msra.mxu1 %v1293_v50  ;;  %v1346_v49 = vld [vmem:[%s2533_s4 + $0x368] sm:$0xff]  ;;  %v1252_v50 = vld [vmem:[#allocation6] ss:$0 sm:$0xff] }
 0x144   : > { %1602 = vmatprep.subr.mxu0 %v1856_v43  ;;  %1637 = vmatprep.subr.mxu1 %v1856_v43 }
 0x145   : > { %1603 = vmatpush3.msra.mxu0 %v1276_v51  ;;  %1638 = vmatpush3.msra.mxu1 %v1292_v52  ;;  %v1858_v51 = vmov 0   ;;  %v1345_v52 = vld [vmem:[%s2533_s4 + $0x360] sm:$0xff] }
 0x146   : > { %1604 = vmatprep.subr.mxu0 %v1856_v43  ;;  %1639 = vmatprep.subr.mxu1 %v1856_v43 }
 0x147   : > { %1605 = vmatpush3.msra.mxu0 %v1275_v53  ;;  %1640 = vmatpush3.msra.mxu1 %v1291_v54  ;;  %v1361_v53 = vld [vmem:[%s2533_s4 + $0x3e0] sm:$0xff]  ;;  %v1344_v54 = vld [vmem:[%s2533_s4 + $0x358] sm:$0xff] }
 0x148   : > { %1606 = vmatprep.subr.mxu0 %v1856_v43  ;;  %1641 = vmatprep.subr.mxu1 %v1856_v43 }
 0x149   : > { %1607 = vmatpush3.msra.mxu0 %v1274_v55  ;;  %1642 = vmatpush3.msra.mxu1 %v1290_v56  ;;  %v1360_v55 = vld [vmem:[%s2533_s4 + $0x3d8] sm:$0xff]  ;;  %v1343_v56 = vld [vmem:[%s2533_s4 + $0x350] sm:$0xff] }
 0x14a   : > { %1608 = vmatprep.subr.mxu0 %v1856_v43  ;;  %1643 = vmatprep.subr.mxu1 %v1856_v43 }
 0x14b   : > { %1609 = vmatpush3.msra.mxu0 %v1273_v57  ;;  %1644 = vmatpush3.msra.mxu1 %v1289_v58  ;;  %v1359_v57 = vld [vmem:[%s2533_s4 + $0x3d0] sm:$0xff]  ;;  %v1342_v58 = vld [vmem:[%s2533_s4 + $0x348] sm:$0xff] }
 0x14c   : > { %1610 = vmatprep.subr.mxu0 %v1856_v43  ;;  %1645 = vmatprep.subr.mxu1 %v1856_v43 }
 0x14d   : > { %1611 = vmatpush3.msra.mxu0 %v1272_v59  ;;  %1646 = vmatpush3.msra.mxu1 %v1288_v60  ;;  %v1358_v59 = vld [vmem:[%s2533_s4 + $0x3c8] sm:$0xff]  ;;  %v1341_v60 = vld [vmem:[%s2533_s4 + $0x340] sm:$0xff] }
 0x14e   : > { %1612 = vmatprep.subr.mxu0 %v1856_v43  ;;  %1647 = vmatprep.subr.mxu1 %v1856_v43 }
 0x14f   : > { %1613 = vmatpush3.msra.mxu0 %v1271_v61  ;;  %1648 = vmatpush3.msra.mxu1 %v1287_v62  ;;  %v1357_v61 = vld [vmem:[%s2533_s4 + $0x3c0] sm:$0xff]  ;;  %v1340_v62 = vld [vmem:[%s2533_s4 + $0x338] sm:$0xff] }
 0x150   : > { %1614 = vmatprep.subr.mxu0 %v1856_v43  ;;  %1649 = vmatprep.subr.mxu1 %v1856_v43 }
 0x151   : > { %1615 = vmatpush3.msra.mxu0 %v1270_v1  ;;  %1650 = vmatpush3.msra.mxu1 %v1286_v2  ;;  %v1355_v1 = vld [vmem:[%s2533_s4 + $0x3b0] sm:$0xff]  ;;  %v1338_v2 = vld [vmem:[%s2533_s4 + $0x328] sm:$0xff] }
 0x152   : > { %1616 = vmatprep.subr.mxu0 %v1856_v43  ;;  %1651 = vmatprep.subr.mxu1 %v1856_v43 }
 0x153   : > { %1617 = vmatpush3.msra.mxu0 %v1269_v7  ;;  %1618 = vmatprep.mubr.msk.f32.mxu0 %vm1857_vm2, %v1856_v43  ;;  %v1353_v7 = vld [vmem:[%s2533_s4 + $0x3a0] sm:$0xff] }
 0x154   : > { %1652 = vmatpush3.msra.mxu1 %v1285_v8  ;;  %1619 = vmatmul.mubr.f32.vlgmr.msra.gmra.mxu0 %v639_v9  ;;  %v1336_v8 = vld [vmem:[%s2533_s4 + $0x318] sm:$0xff] }
 0x155   : > { %1653 = vmatprep.mubr.msk.f32.mxu1 %vm1857_vm2, %v1856_v43  ;;  %1656 = vmatprep.subr.mxu0 %v1856_v43  ;;  %v1352_v9 = vld [vmem:[%s2533_s4 + $0x398] sm:$0xff] }
 0x156   : > { %1691 = vmatprep.subr.mxu1 %v1856_v43  ;;  %1654 = vmatmul.mubr.f32.vlgmr.msra.gmra.mxu1 %v731_v4  ;;  %v1335_v4 = vld [vmem:[%s2533_s4 + $0x310] sm:$0xff] }
 0x157   : > { %1657 = vmatpush3.msra.mxu0 %v1316_v5  ;;  %1692 = vmatpush3.msra.mxu1 %v1332_v10  ;;  %v1351_v5 = vld [vmem:[%s2533_s4 + $0x390] sm:$0xff]  ;;  %v1334_v10 = vld [vmem:[%s2533_s4 + $0x308] sm:$0xff] }
 0x158   : > { %1658 = vmatprep.subr.mxu0 %v1856_v43  ;;  %1693 = vmatprep.subr.mxu1 %v1856_v43 }
 0x159   : > { %1659 = vmatpush3.msra.mxu0 %v1315_v11  ;;  %1694 = vmatpush3.msra.mxu1 %v1331_v12  ;;  %v1350_v11 = vld [vmem:[%s2533_s4 + $0x388] sm:$0xff]  ;;  %v1333_v12 = vld [vmem:[%s2533_s4 + $0x300] sm:$0xff] }
 0x15a   : > { %1660 = vmatprep.subr.mxu0 %v1856_v43  ;;  %1695 = vmatprep.subr.mxu1 %v1856_v43 }
 0x15b   : > { %1661 = vmatpush3.msra.mxu0 %v1314_v13  ;;  %1696 = vmatpush3.msra.mxu1 %v1330_v15  ;;  %v1349_v13 = vld [vmem:[%s2533_s4 + $0x380] sm:$0xff] }
 0x15c   : > { %1662 = vmatprep.subr.mxu0 %v1856_v43  ;;  %1697 = vmatprep.subr.mxu1 %v1856_v43 }
 0x15d   : > { %1663 = vmatpush3.msra.mxu0 %v1313_v16  ;;  %1698 = vmatpush3.msra.mxu1 %v1329_v17 }
 0x15e   : > { %1664 = vmatprep.subr.mxu0 %v1856_v43  ;;  %1699 = vmatprep.subr.mxu1 %v1856_v43 }
 0x15f   : > { %1665 = vmatpush3.msra.mxu0 %v1312_v19  ;;  %1700 = vmatpush3.msra.mxu1 %v1328_v20 }
 0x160   : > { %1666 = vmatprep.subr.mxu0 %v1856_v43  ;;  %1701 = vmatprep.subr.mxu1 %v1856_v43 }
 0x161   : > { %1667 = vmatpush3.msra.mxu0 %v1311_v21  ;;  %1702 = vmatpush3.msra.mxu1 %v1327_v24 }
 0x162   : > { %1668 = vmatprep.subr.mxu0 %v1856_v43  ;;  %1703 = vmatprep.subr.mxu1 %v1856_v43 }
 0x163   : > { %1669 = vmatpush3.msra.mxu0 %v1310_v25  ;;  %1704 = vmatpush3.msra.mxu1 %v1326_v26 }
 0x164   : > { %1670 = vmatprep.subr.mxu0 %v1856_v43  ;;  %1705 = vmatprep.subr.mxu1 %v1856_v43 }
 0x165   : > { %1671 = vmatpush3.msra.mxu0 %v1309_v27  ;;  %1706 = vmatpush3.msra.mxu1 %v1325_v28 }
 0x166   : > { %1672 = vmatprep.subr.mxu0 %v1856_v43  ;;  %1707 = vmatprep.subr.mxu1 %v1856_v43 }
 0x167   : > { %1673 = vmatpush3.msra.mxu0 %v1308_v29  ;;  %1708 = vmatpush3.msra.mxu1 %v1324_v30 }
 0x168   : > { %1674 = vmatprep.subr.mxu0 %v1856_v43  ;;  %1709 = vmatprep.subr.mxu1 %v1856_v43 }
 0x169   : > { %1675 = vmatpush3.msra.mxu0 %v1307_v31  ;;  %1710 = vmatpush3.msra.mxu1 %v1323_v32 }
 0x16a   : > { %1676 = vmatprep.subr.mxu0 %v1856_v43  ;;  %1711 = vmatprep.subr.mxu1 %v1856_v43 }
 0x16b   : > { %1677 = vmatpush3.msra.mxu0 %v1306_v33  ;;  %1712 = vmatpush3.msra.mxu1 %v1322_v34 }
 0x16c   : > { %1678 = vmatprep.subr.mxu0 %v1856_v43  ;;  %1713 = vmatprep.subr.mxu1 %v1856_v43 }
 0x16d   : > { %1679 = vmatpush3.msra.mxu0 %v1305_v35  ;;  %1714 = vmatpush3.msra.mxu1 %v1321_v36 }
 0x16e   : > { %1680 = vmatprep.subr.mxu0 %v1856_v43  ;;  %1715 = vmatprep.subr.mxu1 %v1856_v43 }
 0x16f   : > { %1681 = vmatpush3.msra.mxu0 %v1304_v37  ;;  %1716 = vmatpush3.msra.mxu1 %v1320_v38 }
 0x170   : > { %1682 = vmatprep.subr.mxu0 %v1856_v43  ;;  %1717 = vmatprep.subr.mxu1 %v1856_v43 }
 0x171   : > { %1683 = vmatpush3.msra.mxu0 %v1303_v39  ;;  %1718 = vmatpush3.msra.mxu1 %v1319_v40 }
 0x172   : > { %1684 = vmatprep.subr.mxu0 %v1856_v43  ;;  %1719 = vmatprep.subr.mxu1 %v1856_v43 }
 0x173   : > { %1685 = vmatpush3.msra.mxu0 %v1302_v41  ;;  %1720 = vmatpush3.msra.mxu1 %v1318_v42 }
 0x174   : > { %1686 = vmatprep.subr.mxu0 %v1856_v43  ;;  %1721 = vmatprep.subr.mxu1 %v1856_v43 }
 0x175   : > { %1687 = vmatpush3.msra.mxu0 %v1301_v44  ;;  %1688 = vmatprep.mubr.msk.f32.mxu0 %vm1857_vm2, %v1856_v43 }
 0x176   : > { %1722 = vmatpush3.msra.mxu1 %v1317_v45  ;;  %1689 = vmatmul.mubr.f32.vlgmr.msra.gmra.mxu0 %v2052_v14  ;;  %v1347_v14 = vld [vmem:[%s2533_s4 + $0x370] sm:$0xff] }
 0x177   : > { %1723 = vmatprep.mubr.msk.f32.mxu1 %vm1857_vm2, %v1856_v43  ;;  %1726 = vmatprep.subr.mxu0 %v1856_v43 }
 0x178   : > { %1761 = vmatprep.subr.mxu1 %v1856_v43  ;;  %1724 = vmatmul.mubr.f32.vlgmr.msra.gmra.mxu1 %v2058_v18  ;;  %v1362_v18 = vld [vmem:[%s2533_s4 + $0x3e8] sm:$0xff] }
 0x179   : > { %1727 = vmatpush3.msra.mxu0 %v1348_v46  ;;  %1762 = vmatpush3.msra.mxu1 %v1364_v47 }
 0x17a   : > { %1728 = vmatprep.subr.mxu0 %v1856_v43  ;;  %1763 = vmatprep.subr.mxu1 %v1856_v43 }
 0x17b   : > { %1729 = vmatpush3.msra.mxu0 %v1347_v14  ;;  %1764 = vmatpush3.msra.mxu1 %v1363_v48 }
 0x17c   : > { %1730 = vmatprep.subr.mxu0 %v1856_v43  ;;  %1765 = vmatprep.subr.mxu1 %v1856_v43 }
 0x17d   : > { %1826 = vset.pattern.permute.xlu0 %v1858_v51  ;;  %1731 = vmatpush3.msra.mxu0 %v1346_v49 }
 0x17e   : > { %1766 = vmatpush3.msra.mxu1 %v1362_v18  ;;  %433 = vperm.xlu0 %1826, %v1252_v50  }
 0x17f   : > { %1732 = vmatprep.subr.mxu0 %v1856_v43  ;;  %1767 = vmatprep.subr.mxu1 %v1856_v43 }
 0x180   : > { %1733 = vmatpush3.msra.mxu0 %v1345_v52  ;;  %1768 = vmatpush3.msra.mxu1 %v1361_v53 }
 0x181   : > { %1734 = vmatprep.subr.mxu0 %v1856_v43  ;;  %1769 = vmatprep.subr.mxu1 %v1856_v43 }
 0x182   : > { %1735 = vmatpush3.msra.mxu0 %v1344_v54  ;;  %1770 = vmatpush3.msra.mxu1 %v1360_v55 }
 0x183   : > { %1736 = vmatprep.subr.mxu0 %v1856_v43  ;;  %1771 = vmatprep.subr.mxu1 %v1856_v43 }
 0x184   : > { %1737 = vmatpush3.msra.mxu0 %v1343_v56  ;;  %1772 = vmatpush3.msra.mxu1 %v1359_v57 }
 0x185   : > { %1738 = vmatprep.subr.mxu0 %v1856_v43  ;;  %1773 = vmatprep.subr.mxu1 %v1856_v43 }
 0x186   : > { %1739 = vmatpush3.msra.mxu0 %v1342_v58  ;;  %1774 = vmatpush3.msra.mxu1 %v1358_v59 }
 0x187   : > { %1740 = vmatprep.subr.mxu0 %v1856_v43  ;;  %1775 = vmatprep.subr.mxu1 %v1856_v43 }
 0x188   : > { %1741 = vmatpush3.msra.mxu0 %v1341_v60  ;;  %1776 = vmatpush3.msra.mxu1 %v1357_v61 }
 0x189   : > { %1742 = vmatprep.subr.mxu0 %v1856_v43  ;;  %1777 = vmatprep.subr.mxu1 %v1856_v43 }
 0x18a   : > { %1743 = vmatpush3.msra.mxu0 %v1340_v62  ;;  %1778 = vmatpush3.msra.mxu1 %v1356_v63 }
 0x18b   : > { %1744 = vmatprep.subr.mxu0 %v1856_v43  ;;  %1779 = vmatprep.subr.mxu1 %v1856_v43 }
 0x18c   : > { %1745 = vmatpush3.msra.mxu0 %v1339_v0  ;;  %1780 = vmatpush3.msra.mxu1 %v1355_v1 }
 0x18d   : > { %1746 = vmatprep.subr.mxu0 %v1856_v43  ;;  %1781 = vmatprep.subr.mxu1 %v1856_v43 }
 0x18e   : > { %1747 = vmatpush3.msra.mxu0 %v1338_v2  ;;  %1782 = vmatpush3.msra.mxu1 %v1354_v3 }
 0x18f   : > { %1748 = vmatprep.subr.mxu0 %v1856_v43  ;;  %1783 = vmatprep.subr.mxu1 %v1856_v43 }
 0x190   : > { %1749 = vmatpush3.msra.mxu0 %v1337_v6  ;;  %1784 = vmatpush3.msra.mxu1 %v1353_v7 }
 0x191   : > { %1750 = vmatprep.subr.mxu0 %v1856_v43  ;;  %1785 = vmatprep.subr.mxu1 %v1856_v43 }
 0x192   : > { %1751 = vmatpush3.msra.mxu0 %v1336_v8  ;;  %1786 = vmatpush3.msra.mxu1 %v1352_v9 }
 0x193   : > { %1752 = vmatprep.subr.mxu0 %v1856_v43  ;;  %1787 = vmatprep.subr.mxu1 %v1856_v43 }
 0x194   : > { %1753 = vmatpush3.msra.mxu0 %v1335_v4  ;;  %1788 = vmatpush3.msra.mxu1 %v1351_v5 }
 0x195   : > { %1754 = vmatprep.subr.mxu0 %v1856_v43  ;;  %1789 = vmatprep.subr.mxu1 %v1856_v43 }
 0x196   : > { %1755 = vmatpush3.msra.mxu0 %v1334_v10  ;;  %1790 = vmatpush3.msra.mxu1 %v1350_v11 }
 0x197   : > { %1756 = vmatprep.subr.mxu0 %v1856_v43  ;;  %1791 = vmatprep.subr.mxu1 %v1856_v43 }
 0x198   : > { %1757 = vmatpush3.msra.mxu0 %v1333_v12  ;;  %1758 = vmatprep.mubr.msk.f32.mxu0 %vm1857_vm2, %v1856_v43 }
 0x199   : > { %1792 = vmatpush3.msra.mxu1 %v1349_v13  ;;  %1793 = vmatprep.mubr.msk.f32.mxu1 %vm1857_vm2, %v1856_v43 }
 0x19a   : > { %1759 = vmatmul.mubr.f32.vlgmr.msra.gmra.mxu0 %v2070_v22  ;;  %1794 = vmatmul.mubr.f32.vlgmr.msra.gmra.mxu1 %v2073_v23 }
 0x1f2   : > { %v524_v15 = vpop.f32.mrf.mxu0 }
 0x1f4   : > { %v615_v16 = vpop.f32.mrf.mxu1  ;;  %v1550_v17 = vpop.f32.mrf.mxu0 }
 0x1f6   : > { %v1585_v19 = vpop.f32.mrf.mxu1 }
 0x1f9   : > { %v434_v20 = vpop.permute.xlu0 %433 }
 0x1fa   : > { %v528_v21 = vadd.f32 %v524_v15, %v434_v20 }
 0x1fc   : > { %v619_v24 = vadd.f32 %v615_v16, %v528_v21 }
 0x214   : > { %v707_v25 = vpop.f32.mrf.mxu0 }
 0x215   : > { %v711_v43 = vadd.f32 %v707_v25, %v619_v24 }
 0x216   : > { %v799_v26 = vpop.f32.mrf.mxu1  ;;  %v1620_v27 = vpop.f32.mrf.mxu0 }
 0x217   : > { %v803_v33 = vadd.f32 %v799_v26, %v711_v43 }
 0x218   : > { %v1655_v28 = vpop.f32.mrf.mxu1 }
 0x236   : > { %v891_v29 = vpop.f32.mrf.mxu0 }
 0x237   : > { %v895_v22 = vadd.f32 %v891_v29, %v803_v33 }
 0x238   : > { %v983_v30 = vpop.f32.mrf.mxu1  ;;  %v1690_v31 = vpop.f32.mrf.mxu0 }
 0x239   : > { %v987_v34 = vadd.f32 %v983_v30, %v895_v22 }
 0x23a   : > { %v1725_v32 = vpop.f32.mrf.mxu1 }
 0x25a   : > { %v1075_v23 = vpop.f32.mrf.mxu0  ;;  %v1167_v35 = vpop.f32.mrf.mxu1 }
 0x25b   : > { %v1079_v36 = vadd.f32 %v1075_v23, %v987_v34 }
 0x25c   : > { %v1760_v37 = vpop.f32.mrf.mxu0  ;;  %v1795_v38 = vpop.f32.mrf.mxu1 }
 0x25d   : > { %v1171_v39 = vadd.f32 %v1167_v35, %v1079_v36 }
 0x25f   : > { %v1365_v40 = vmul.f32 -1.442695, %v1171_v39 }
 0x261   : > { %1827 = vpow2.f32 %v1365_v40 }
 0x26e   : > { %v1828_v41 = vpop.eup %1827 }
 0x26f   : > { %v1175_v42 = vadd.f32 1.0, %v1828_v41 }
 0x271   : > { %1829 = vrcp.f32 %v1175_v42 }
 0x27e   : > { %v1830_v44 = vpop.eup %1829 }
 0x27f   : > { %1179 = vst.msk [vmem:[%s2535_s6] sm:$0x3] %vm1178_vm3, %v1830_v44 }
 0x280 PF: > { %s18_s25 = sadd.s32 1, %s1853_s25   ;;  %s2536_s23 = smov %s1849_s24 }
 0x281   : > { %p15_p6 = scmp.ge.s32.totalorder %s18_s25, 4   ;;  %s2537_s24 = smov %s2539_s5 }
 0x283   :  { %17 = sbr.rel (!%p15_p6) target bundleno = 3 (0x3), region = 97 }

</bundles_post_ra>
